<compile_context>
chip_gen: v6e
topology: v6e:2x2x1
jax: 0.10.0
libtpu: 0.0.40
codegen_flags: <defaults>
</compile_context>

<pallas_src>
import functools

import jax
import jax.numpy as jnp
import numpy as np
from jax import lax
from jax.experimental import pallas as pl
from jax.experimental.pallas import tpu as pltpu

# Plain Python floats: module-level jnp scalars get captured as constants by
# pallas_call and rejected, so the sentinels stay weak-typed literals.
_NEG_SENTINEL = -1e30
_POS_SENTINEL = 1e30


def _triplet_block_kernel(label_col_ref, label_row_ref, yy_ref, e1_ref, e2_ref,
                          out_ref, *, topk, m, gamma):
    e1 = e1_ref[...]                    # (TM, D) native dtype (bf16 fast path)
    e2 = e2_ref[...]                    # (N,  D) native dtype, resident RHS
    yy = yy_ref[...]                    # (1,  N) f32, precomputed in wrapper
    tm = e1.shape[0]
    n = e2.shape[0]

    e1f = e1.astype(jnp.float32)
    xx = jnp.sum(e1f * e1f, axis=1, keepdims=True)                  # (TM, 1)

    # ---- squared euclidean distances (no (TM, N) sqrt: ordering identical) --
    # Contract feature dim of BOTH operands -> no (D, N) transpose of emb2.
    gram = lax.dot_general(e1, e2, (((1,), (1,)), ((), ())),
                           preferred_element_type=jnp.float32)      # (TM, N)
    dist2 = jnp.maximum(xx + yy - 2.0 * gram, 0.0)                  # (TM, N)

    # ---- similarity mask from labels (bool, never materialized as f32) ------
    sim = label_col_ref[...] == label_row_ref[...]                  # (TM, N)
    col_ids = lax.broadcasted_iota(jnp.int32, (1, n), 1)            # (1, N)

    # 0/1 weights accumulate exactly in bf16 (sums <= topk), feeding the MXU
    # dots without an extra cast pass.
    w_dtype = e2.dtype if e2.dtype.name in ("bfloat16", "float32") else jnp.float32

    # ---- top-K hard mining: weights are sums of one-hots so that
    #      mean(emb2[idx], dim=1) == (w @ emb2) / topK  (a second MXU matmul).
    def mine(work, pick_max):
        def body(_, carry):
            wk, w = carry
            if pick_max:
                mval = jnp.max(wk, axis=1, keepdims=True)
            else:
                mval = jnp.min(wk, axis=1, keepdims=True)
            hit = wk == mval
            idx = jnp.min(jnp.where(hit, col_ids, n), axis=1, keepdims=True)
            onehot = col_ids == idx
            w = w + onehot.astype(w_dtype)
            wk = jnp.where(onehot, -jnp.inf if pick_max else jnp.inf, wk)
            return wk, w

        w0 = jnp.zeros((tm, n), w_dtype)
        if topk <= 4:
            carry = (work, w0)
            for _ in range(topk):
                carry = body(0, carry)
            return carry[1]
        # Larger topk: visible loop keeps the scheduler's live set per-iter.
        return lax.fori_loop(0, topk, body, (work, w0), unroll=True)[1]

    pos_work = jnp.where(sim, dist2, _NEG_SENTINEL)       # pick max (descending)
    w_ap = mine(pos_work, pick_max=True)                  # (TM, N) 0/1 weights
    neg_work = jnp.where(sim, _POS_SENTINEL, dist2)       # pick min (ascending)
    w_an = mine(neg_work, pick_max=False)                 # (TM, N)

    # ---- group means: two back-to-back dots, emb2 stationary RHS ------------
    inv_k = 1.0 / topk
    mean_ap = jnp.dot(w_ap, e2, preferred_element_type=jnp.float32) * inv_k
    mean_an = jnp.dot(w_an, e2, preferred_element_type=jnp.float32) * inv_k

    dp = e1f - mean_ap
    dn = e1f - mean_an
    d_ap = jnp.sqrt(jnp.sum(dp * dp, axis=1, keepdims=True))        # (TM, 1)
    d_an = jnp.sqrt(jnp.sum(dn * dn, axis=1, keepdims=True))        # (TM, 1)

    # ---- log_softmax over the (ap, an) pair -> sp / sn (see NOTE) -----------
    mx = jnp.maximum(d_ap, d_an)
    lse = mx + jnp.log(jnp.exp(d_ap - mx) + jnp.exp(d_an - mx))
    sp = jnp.exp(d_ap - lse)                                        # (TM, 1)
    sn = jnp.exp(d_an - lse)                                        # (TM, 1)

    # ---- circle-loss logits; detach() is a no-op (forward only) -------------
    ap_w = jnp.maximum(1.0 + m - sp, 0.0)
    an_w = jnp.maximum(sn + m, 0.0)
    logit_p = -ap_w * (sp - (1.0 - m)) * gamma                      # (TM, 1)
    logit_n = an_w * (sn - m) * gamma                               # (TM, 1)
    out_ref[...] = jnp.concatenate([logit_p, logit_n], axis=1)      # (TM, 2)


def _vmem_budget_bytes():
    """Per-generation usable VMEM budget for this kernel."""
    phys = 64 * 1024 * 1024
    try:
        phys = int(pltpu.get_tpu_info().vmem_capacity_bytes)
    except Exception:
        pass
    if phys <= 64 * 1024 * 1024:
        # v7x-class (64 MiB): leave headroom for Mosaic internal scratch.
        return 52 * 1024 * 1024
    # v5e / v6e (128 MiB physical): use well beyond the default scoped limit.
    return 100 * 1024 * 1024


def _pick_block_rows(n, d, itemsize, budget):
    """Largest row-block TM whose per-step live set fits the VMEM budget."""
    cands = [t for t in (512, 256, 128, 64, 32, 16, 8) if n % t == 0] or [n]

    def footprint(tm):
        return (2 * tm * d * itemsize        # double-buffered emb1 block
                + 2 * n * d * itemsize       # emb2 resident (pipeliner keeps 2 bufs)
                + 10 * tm * n * 4            # (TM, N) f32 mining temporaries
                + 3 * tm * d * 4             # e1f + two f32 group means
                + 4 * n * 4 + (64 << 10))

    tm = cands[-1]
    for t in cands:
        if footprint(t) <= budget:
            tm = t
            break
    # Prefer >=2 grid blocks at large N so a multi-TC chip (v7x) splits rows.
    if tm == n and n >= 256:
        smaller = [t for t in cands if t < n]
        if smaller:
            tm = smaller[0]
    return tm, footprint(tm)


def enhanced_topk_triplet_loss(emb1, emb2, label, *, topk=1, m=0.25,
                               gamma=128.0, normalize_feature=False):
    """Pallas implementation of EnhancedTopKTripletLoss.forward (scalar loss)."""
    if normalize_feature:
        emb1 = emb1 / jnp.maximum(jnp.linalg.norm(emb1, axis=1, keepdims=True), 1e-12)
        emb2 = emb2 / jnp.maximum(jnp.linalg.norm(emb2, axis=1, keepdims=True), 1e-12)

    n, d = emb1.shape
    itemsize = jnp.dtype(emb1.dtype).itemsize
    budget = _vmem_budget_bytes()
    tm, est = _pick_block_rows(n, d, itemsize, budget)
    num_blocks = n // tm

    label = label.astype(jnp.int32)
    label_col = label.reshape(n, 1)
    label_row = label.reshape(1, n)
    # Hoisted yy: removes the per-step (N, D) f32 copy of emb2 in the kernel.
    yy = jnp.sum(jnp.square(emb2.astype(jnp.float32)), axis=1).reshape(1, n)

    kernel = functools.partial(_triplet_block_kernel, topk=int(topk),
                               m=float(m), gamma=float(gamma))

    vmem_limit = int(min(max(2 * est, 32 * 1024 * 1024), budget))

    grid_spec = pltpu.PrefetchScalarGridSpec(
        num_scalar_prefetch=0,
        grid=(num_blocks,),
        in_specs=[
            pl.BlockSpec((tm, 1), lambda i: (i, 0)),   # labels, column view
            pl.BlockSpec((1, n), lambda i: (0, 0)),    # labels, row view
            pl.BlockSpec((1, n), lambda i: (0, 0)),    # precomputed yy (f32)
            pl.BlockSpec((tm, d), lambda i: (i, 0)),   # emb1 row block
            pl.BlockSpec((n, d), lambda i: (0, 0)),    # emb2, resident RHS
        ],
        out_specs=pl.BlockSpec((tm, 2), lambda i: (i, 0)),  # (logit_p, logit_n)
    )

    logits = pl.pallas_call(
        kernel,
        out_shape=jax.ShapeDtypeStruct((n, 2), jnp.float32),
        grid_spec=grid_spec,
        compiler_params=pltpu.CompilerParams(
            dimension_semantics=("parallel",),
            vmem_limit_bytes=vmem_limit),
    )(label_col, label_row, yy, emb1, emb2)

    # Tiny scalar epilogue in plain JAX (reduction over N scalars only).
    z = (jax.scipy.special.logsumexp(logits[:, 1])
         + jax.scipy.special.logsumexp(logits[:, 0]))
    return jax.nn.softplus(z)   # .mean() of a scalar == itself


def _reference_loss(emb1, emb2, label, *, topk=1, m=0.25, gamma=128.0):
    """Pure-JAX reference mirroring the PyTorch forward (same sp/sn convention)."""
    xx = jnp.sum(emb1 ** 2, axis=1, keepdims=True)
    yy = jnp.sum(emb2 ** 2, axis=1, keepdims=True).T
    dist = jnp.sqrt(jnp.clip(xx + yy - 2.0 * emb1 @ emb2.T, 1e-12))
    sim = (label[:, None] == label[None, :]).astype(jnp.float32)
    pos = dist + (-9999999.0) * (1.0 - sim)
    neg = dist + 9999999.0 * sim
    ap_idx = jnp.argsort(-pos, axis=1)[:, :topk]
    an_idx = jnp.argsort(neg, axis=1)[:, :topk]
    mean_ap = jnp.mean(emb2[ap_idx], axis=1)
    mean_an = jnp.mean(emb2[an_idx], axis=1)
    d_ap = jnp.sqrt(jnp.sum((emb1 - mean_ap) ** 2, axis=1))
    d_an = jnp.sqrt(jnp.sum((emb1 - mean_an) ** 2, axis=1))
    td = jax.nn.log_softmax(jnp.stack([d_ap, d_an], axis=1), axis=1)
    sp, sn = jnp.exp(td[:, 0]), jnp.exp(td[:, 1])
    ap_w = jnp.maximum(-sp + 1.0 + m, 0.0)
    an_w = jnp.maximum(sn + m, 0.0)
    lp = -ap_w * (sp - (1.0 - m)) * gamma
    ln = an_w * (sn - m) * gamma
    z = jax.scipy.special.logsumexp(ln) + jax.scipy.special.logsumexp(lp)
    return jax.nn.softplus(z)


if __name__ == "__main__":
    N, D = 8, 32          # batch of 8 embeddings, hidden dim 32
    TOPK = 2

    key = jax.random.PRNGKey(0)
    k1, k2 = jax.random.split(key)
    # bf16 inputs exercise the native-dtype MXU fast path.
    emb1 = jax.random.normal(k1, (N, D), dtype=jnp.float32).astype(jnp.bfloat16)
    emb2 = jax.random.normal(k2, (N, D), dtype=jnp.float32).astype(jnp.bfloat16)
    label = jnp.array([0, 0, 1, 1, 2, 2, 3, 3], dtype=jnp.int32)

    loss = enhanced_topk_triplet_loss(emb1, emb2, label, topk=TOPK, m=0.25,
                                      gamma=128.0)
    loss = jax.block_until_ready(loss)

    ref = jax.block_until_ready(
        _reference_loss(emb1.astype(jnp.float32), emb2.astype(jnp.float32),
                        label, topk=TOPK, m=0.25, gamma=128.0))
    np.testing.assert_allclose(np.asarray(loss), np.asarray(ref),
                               rtol=2e-3, atol=2e-3)

    print("KERNEL_OK")
</pallas_src>

<mosaic_0001>
module attributes {stable_mosaic.version = 11 : i64} {
  func.func @_triplet_block_kernel(%arg0: i32, %arg1: memref<8x1xi32, #tpu.memory_space<vmem>>, %arg2: memref<1x8xi32, #tpu.memory_space<vmem>>, %arg3: memref<1x8xf32, #tpu.memory_space<vmem>>, %arg4: memref<8x32xbf16, #tpu.memory_space<vmem>>, %arg5: memref<8x32xbf16, #tpu.memory_space<vmem>>, %arg6: memref<8x2xf32, #tpu.memory_space<vmem>>) attributes {dimension_semantics = [#tpu.dimension_semantics<parallel>], iteration_bounds = array<i64: 1>, scalar_prefetch = 0 : i64, scratch_operands = 0 : i64, tpu.core_type = #tpu.core_type<tc>, window_params = [{transform_indices = @transform_0, window_bounds = array<i64: 8, 1>}, {pipeline_mode = #tpu.pipeline_mode<synchronous>, transform_indices = @transform_1, window_bounds = array<i64: 1, 8>}, {pipeline_mode = #tpu.pipeline_mode<synchronous>, transform_indices = @transform_2, window_bounds = array<i64: 1, 8>}, {transform_indices = @transform_3, window_bounds = array<i64: 8, 32>}, {pipeline_mode = #tpu.pipeline_mode<synchronous>, transform_indices = @transform_4, window_bounds = array<i64: 8, 32>}, {transform_indices = @transform_5, window_bounds = array<i64: 8, 2>}]} {
    %c0 = arith.constant 0 : index
    %c0_0 = arith.constant 0 : index
    %0 = vector.load %arg4[%c0, %c0_0] : memref<8x32xbf16, #tpu.memory_space<vmem>>, vector<8x32xbf16>
    %c0_1 = arith.constant 0 : index
    %c0_2 = arith.constant 0 : index
    %1 = vector.load %arg5[%c0_1, %c0_2] : memref<8x32xbf16, #tpu.memory_space<vmem>>, vector<8x32xbf16>
    %c0_3 = arith.constant 0 : index
    %c0_4 = arith.constant 0 : index
    %2 = vector.load %arg3[%c0_3, %c0_4] : memref<1x8xf32, #tpu.memory_space<vmem>>, vector<1x8xf32>
    %3 = arith.extf %0 : vector<8x32xbf16> to vector<8x32xf32>
    %4 = arith.mulf %3, %3 : vector<8x32xf32>
    %cst = arith.constant dense<0.000000e+00> : vector<8xf32>
    %5 = vector.multi_reduction <add>, %4, %cst [1] : vector<8x32xf32> to vector<8xf32>
    %6 = vector.shape_cast %5 : vector<8xf32> to vector<8x1xf32>
    %cst_5 = arith.constant dense<0.000000e+00> : vector<8x8xf32>
    %7 = tpu.matmul %0, %1, %cst_5 {dimension_numbers = #tpu.dot_dimension_numbers<[1], [1], [0], [0], [0, 0, 1, 0], [], []>} : vector<8x32xbf16>, vector<8x32xbf16>, vector<8x8xf32> -> vector<8x8xf32>
    %8 = vector.broadcast %6 : vector<8x1xf32> to vector<8x8xf32>
    %9 = vector.broadcast %2 : vector<1x8xf32> to vector<8x8xf32>
    %10 = arith.addf %8, %9 : vector<8x8xf32>
    %cst_6 = arith.constant 2.000000e+00 : f32
    %11 = vector.broadcast %cst_6 : f32 to vector<8x8xf32>
    %12 = arith.mulf %11, %7 : vector<8x8xf32>
    %13 = arith.subf %10, %12 : vector<8x8xf32>
    %cst_7 = arith.constant 0.000000e+00 : f32
    %14 = vector.broadcast %cst_7 : f32 to vector<8x8xf32>
    %15 = arith.maximumf %13, %14 : vector<8x8xf32>
    %c0_8 = arith.constant 0 : index
    %c0_9 = arith.constant 0 : index
    %16 = vector.load %arg1[%c0_8, %c0_9] : memref<8x1xi32, #tpu.memory_space<vmem>>, vector<8x1xi32>
    %c0_10 = arith.constant 0 : index
    %c0_11 = arith.constant 0 : index
    %17 = vector.load %arg2[%c0_10, %c0_11] : memref<1x8xi32, #tpu.memory_space<vmem>>, vector<1x8xi32>
    %18 = vector.broadcast %16 : vector<8x1xi32> to vector<8x8xi32>
    %19 = vector.broadcast %17 : vector<1x8xi32> to vector<8x8xi32>
    %20 = arith.cmpi eq, %18, %19 : vector<8x8xi32>
    %21 = tpu.iota {dimensions = array<i32: 1>} : vector<1x8xi32>
    %cst_12 = arith.constant -1.000000e+30 : f32
    %22 = vector.broadcast %cst_12 : f32 to vector<8x8xf32>
    %23 = arith.select %20, %15, %22 : vector<8x8xi1>, vector<8x8xf32>
    %cst_13 = arith.constant 0.000000e+00 : bf16
    %24 = vector.broadcast %cst_13 : bf16 to vector<8x8xbf16>
    %cst_14 = arith.constant dense<0xFF800000> : vector<8xf32>
    %25 = vector.multi_reduction <maximumf>, %23, %cst_14 [1] : vector<8x8xf32> to vector<8xf32>
    %26 = vector.shape_cast %25 : vector<8xf32> to vector<8x1xf32>
    %27 = vector.broadcast %26 : vector<8x1xf32> to vector<8x8xf32>
    %28 = arith.cmpf oeq, %23, %27 : vector<8x8xf32>
    %c8_i32 = arith.constant 8 : i32
    %29 = vector.shape_cast %21 : vector<1x8xi32> to vector<1x8xi32>
    %30 = vector.broadcast %29 : vector<1x8xi32> to vector<8x8xi32>
    %31 = vector.broadcast %c8_i32 : i32 to vector<8x8xi32>
    %32 = arith.select %28, %30, %31 : vector<8x8xi1>, vector<8x8xi32>
    %cst_15 = arith.constant dense<2147483647> : vector<8xi32>
    %33 = vector.multi_reduction <minsi>, %32, %cst_15 [1] : vector<8x8xi32> to vector<8xi32>
    %34 = vector.shape_cast %33 : vector<8xi32> to vector<8x1xi32>
    %35 = vector.broadcast %21 : vector<1x8xi32> to vector<8x8xi32>
    %36 = vector.broadcast %34 : vector<8x1xi32> to vector<8x8xi32>
    %37 = arith.cmpi eq, %35, %36 : vector<8x8xi32>
    %38 = arith.extui %37 : vector<8x8xi1> to vector<8x8xi32>
    %39 = arith.sitofp %38 : vector<8x8xi32> to vector<8x8xf32>
    %40 = arith.truncf %39 : vector<8x8xf32> to vector<8x8xbf16>
    %41 = arith.addf %24, %40 : vector<8x8xbf16>
    %cst_16 = arith.constant 0xFF800000 : f32
    %42 = vector.broadcast %cst_16 : f32 to vector<8x8xf32>
    %43 = arith.select %37, %42, %23 : vector<8x8xi1>, vector<8x8xf32>
    %cst_17 = arith.constant dense<0xFF800000> : vector<8xf32>
    %44 = vector.multi_reduction <maximumf>, %43, %cst_17 [1] : vector<8x8xf32> to vector<8xf32>
    %45 = vector.shape_cast %44 : vector<8xf32> to vector<8x1xf32>
    %46 = vector.broadcast %45 : vector<8x1xf32> to vector<8x8xf32>
    %47 = arith.cmpf oeq, %43, %46 : vector<8x8xf32>
    %c8_i32_18 = arith.constant 8 : i32
    %48 = vector.shape_cast %21 : vector<1x8xi32> to vector<1x8xi32>
    %49 = vector.broadcast %48 : vector<1x8xi32> to vector<8x8xi32>
    %50 = vector.broadcast %c8_i32_18 : i32 to vector<8x8xi32>
    %51 = arith.select %47, %49, %50 : vector<8x8xi1>, vector<8x8xi32>
    %cst_19 = arith.constant dense<2147483647> : vector<8xi32>
    %52 = vector.multi_reduction <minsi>, %51, %cst_19 [1] : vector<8x8xi32> to vector<8xi32>
    %53 = vector.shape_cast %52 : vector<8xi32> to vector<8x1xi32>
    %54 = vector.broadcast %21 : vector<1x8xi32> to vector<8x8xi32>
    %55 = vector.broadcast %53 : vector<8x1xi32> to vector<8x8xi32>
    %56 = arith.cmpi eq, %54, %55 : vector<8x8xi32>
    %57 = arith.extui %56 : vector<8x8xi1> to vector<8x8xi32>
    %58 = arith.sitofp %57 : vector<8x8xi32> to vector<8x8xf32>
    %59 = arith.truncf %58 : vector<8x8xf32> to vector<8x8xbf16>
    %60 = arith.addf %41, %59 : vector<8x8xbf16>
    %cst_20 = arith.constant 1.000000e+30 : f32
    %61 = vector.broadcast %cst_20 : f32 to vector<8x8xf32>
    %62 = arith.select %20, %61, %15 : vector<8x8xi1>, vector<8x8xf32>
    %cst_21 = arith.constant 0.000000e+00 : bf16
    %63 = vector.broadcast %cst_21 : bf16 to vector<8x8xbf16>
    %cst_22 = arith.constant dense<0x7F800000> : vector<8xf32>
    %64 = vector.multi_reduction <minimumf>, %62, %cst_22 [1] : vector<8x8xf32> to vector<8xf32>
    %65 = vector.shape_cast %64 : vector<8xf32> to vector<8x1xf32>
    %66 = vector.broadcast %65 : vector<8x1xf32> to vector<8x8xf32>
    %67 = arith.cmpf oeq, %62, %66 : vector<8x8xf32>
    %c8_i32_23 = arith.constant 8 : i32
    %68 = vector.shape_cast %21 : vector<1x8xi32> to vector<1x8xi32>
    %69 = vector.broadcast %68 : vector<1x8xi32> to vector<8x8xi32>
    %70 = vector.broadcast %c8_i32_23 : i32 to vector<8x8xi32>
    %71 = arith.select %67, %69, %70 : vector<8x8xi1>, vector<8x8xi32>
    %cst_24 = arith.constant dense<2147483647> : vector<8xi32>
    %72 = vector.multi_reduction <minsi>, %71, %cst_24 [1] : vector<8x8xi32> to vector<8xi32>
    %73 = vector.shape_cast %72 : vector<8xi32> to vector<8x1xi32>
    %74 = vector.broadcast %21 : vector<1x8xi32> to vector<8x8xi32>
    %75 = vector.broadcast %73 : vector<8x1xi32> to vector<8x8xi32>
    %76 = arith.cmpi eq, %74, %75 : vector<8x8xi32>
    %77 = arith.extui %76 : vector<8x8xi1> to vector<8x8xi32>
    %78 = arith.sitofp %77 : vector<8x8xi32> to vector<8x8xf32>
    %79 = arith.truncf %78 : vector<8x8xf32> to vector<8x8xbf16>
    %80 = arith.addf %63, %79 : vector<8x8xbf16>
    %cst_25 = arith.constant 0x7F800000 : f32
    %81 = vector.broadcast %cst_25 : f32 to vector<8x8xf32>
    %82 = arith.select %76, %81, %62 : vector<8x8xi1>, vector<8x8xf32>
    %cst_26 = arith.constant dense<0x7F800000> : vector<8xf32>
    %83 = vector.multi_reduction <minimumf>, %82, %cst_26 [1] : vector<8x8xf32> to vector<8xf32>
    %84 = vector.shape_cast %83 : vector<8xf32> to vector<8x1xf32>
    %85 = vector.broadcast %84 : vector<8x1xf32> to vector<8x8xf32>
    %86 = arith.cmpf oeq, %82, %85 : vector<8x8xf32>
    %c8_i32_27 = arith.constant 8 : i32
    %87 = vector.shape_cast %21 : vector<1x8xi32> to vector<1x8xi32>
    %88 = vector.broadcast %87 : vector<1x8xi32> to vector<8x8xi32>
    %89 = vector.broadcast %c8_i32_27 : i32 to vector<8x8xi32>
    %90 = arith.select %86, %88, %89 : vector<8x8xi1>, vector<8x8xi32>
    %cst_28 = arith.constant dense<2147483647> : vector<8xi32>
    %91 = vector.multi_reduction <minsi>, %90, %cst_28 [1] : vector<8x8xi32> to vector<8xi32>
    %92 = vector.shape_cast %91 : vector<8xi32> to vector<8x1xi32>
    %93 = vector.broadcast %21 : vector<1x8xi32> to vector<8x8xi32>
    %94 = vector.broadcast %92 : vector<8x1xi32> to vector<8x8xi32>
    %95 = arith.cmpi eq, %93, %94 : vector<8x8xi32>
    %96 = arith.extui %95 : vector<8x8xi1> to vector<8x8xi32>
    %97 = arith.sitofp %96 : vector<8x8xi32> to vector<8x8xf32>
    %98 = arith.truncf %97 : vector<8x8xf32> to vector<8x8xbf16>
    %99 = arith.addf %80, %98 : vector<8x8xbf16>
    %cst_29 = arith.constant dense<0.000000e+00> : vector<8x32xf32>
    %100 = tpu.matmul %60, %1, %cst_29 {dimension_numbers = #tpu.dot_dimension_numbers<[1], [0], [0], [1], [0, 0, 1, 1], [], []>} : vector<8x8xbf16>, vector<8x32xbf16>, vector<8x32xf32> -> vector<8x32xf32>
    %cst_30 = arith.constant 5.000000e-01 : f32
    %101 = vector.broadcast %cst_30 : f32 to vector<8x32xf32>
    %102 = arith.mulf %100, %101 : vector<8x32xf32>
    %cst_31 = arith.constant dense<0.000000e+00> : vector<8x32xf32>
    %103 = tpu.matmul %99, %1, %cst_31 {dimension_numbers = #tpu.dot_dimension_numbers<[1], [0], [0], [1], [0, 0, 1, 1], [], []>} : vector<8x8xbf16>, vector<8x32xbf16>, vector<8x32xf32> -> vector<8x32xf32>
    %cst_32 = arith.constant 5.000000e-01 : f32
    %104 = vector.broadcast %cst_32 : f32 to vector<8x32xf32>
    %105 = arith.mulf %103, %104 : vector<8x32xf32>
    %106 = arith.subf %3, %102 : vector<8x32xf32>
    %107 = arith.subf %3, %105 : vector<8x32xf32>
    %108 = arith.mulf %106, %106 : vector<8x32xf32>
    %cst_33 = arith.constant dense<0.000000e+00> : vector<8xf32>
    %109 = vector.multi_reduction <add>, %108, %cst_33 [1] : vector<8x32xf32> to vector<8xf32>
    %110 = vector.shape_cast %109 : vector<8xf32> to vector<8x1xf32>
    %111 = math.sqrt %110 : vector<8x1xf32>
    %112 = arith.mulf %107, %107 : vector<8x32xf32>
    %cst_34 = arith.constant dense<0.000000e+00> : vector<8xf32>
    %113 = vector.multi_reduction <add>, %112, %cst_34 [1] : vector<8x32xf32> to vector<8xf32>
    %114 = vector.shape_cast %113 : vector<8xf32> to vector<8x1xf32>
    %115 = math.sqrt %114 : vector<8x1xf32>
    %116 = arith.maximumf %111, %115 : vector<8x1xf32>
    %117 = arith.subf %111, %116 : vector<8x1xf32>
    %118 = math.exp %117 : vector<8x1xf32>
    %119 = arith.subf %115, %116 : vector<8x1xf32>
    %120 = math.exp %119 : vector<8x1xf32>
    %121 = arith.addf %118, %120 : vector<8x1xf32>
    %122 = math.log %121 : vector<8x1xf32>
    %123 = arith.addf %116, %122 : vector<8x1xf32>
    %124 = arith.subf %111, %123 : vector<8x1xf32>
    %125 = math.exp %124 : vector<8x1xf32>
    %126 = arith.subf %115, %123 : vector<8x1xf32>
    %127 = math.exp %126 : vector<8x1xf32>
    %cst_35 = arith.constant 1.250000e+00 : f32
    %128 = vector.broadcast %cst_35 : f32 to vector<8x1xf32>
    %129 = arith.subf %128, %125 : vector<8x1xf32>
    %cst_36 = arith.constant 0.000000e+00 : f32
    %130 = vector.broadcast %cst_36 : f32 to vector<8x1xf32>
    %131 = arith.maximumf %129, %130 : vector<8x1xf32>
    %cst_37 = arith.constant 2.500000e-01 : f32
    %132 = vector.broadcast %cst_37 : f32 to vector<8x1xf32>
    %133 = arith.addf %127, %132 : vector<8x1xf32>
    %cst_38 = arith.constant 0.000000e+00 : f32
    %134 = vector.broadcast %cst_38 : f32 to vector<8x1xf32>
    %135 = arith.maximumf %133, %134 : vector<8x1xf32>
    %cst_39 = arith.constant 0.000000e+00 : f32
    %136 = vector.broadcast %cst_39 : f32 to vector<8x1xf32>
    %137 = arith.subf %136, %131 : vector<8x1xf32>
    %cst_40 = arith.constant 7.500000e-01 : f32
    %138 = vector.broadcast %cst_40 : f32 to vector<8x1xf32>
    %139 = arith.subf %125, %138 : vector<8x1xf32>
    %140 = arith.mulf %137, %139 : vector<8x1xf32>
    %cst_41 = arith.constant 1.280000e+02 : f32
    %141 = vector.broadcast %cst_41 : f32 to vector<8x1xf32>
    %142 = arith.mulf %140, %141 : vector<8x1xf32>
    %cst_42 = arith.constant 2.500000e-01 : f32
    %143 = vector.broadcast %cst_42 : f32 to vector<8x1xf32>
    %144 = arith.subf %127, %143 : vector<8x1xf32>
    %145 = arith.mulf %135, %144 : vector<8x1xf32>
    %cst_43 = arith.constant 1.280000e+02 : f32
    %146 = vector.broadcast %cst_43 : f32 to vector<8x1xf32>
    %147 = arith.mulf %145, %146 : vector<8x1xf32>
    %148 = tpu.concatenate %142, %147 in 1 : vector<8x1xf32>, vector<8x1xf32> -> vector<8x2xf32>
    %c0_44 = arith.constant 0 : index
    %c0_45 = arith.constant 0 : index
    %149 = vector.load %arg6[%c0_44, %c0_45] : memref<8x2xf32, #tpu.memory_space<vmem>>, vector<8x2xf32>
    tpu.vector_store %arg6[%c0_44, %c0_45], %148 {strides = array<i32>} : memref<8x2xf32, #tpu.memory_space<vmem>>, vector<8x2xf32>,
    return
  }
  func.func @transform_0(%arg0: i32) -> (i32, i32) {
    %c0_i32 = arith.constant 0 : i32
    %c0_i32_0 = arith.constant 0 : i32
    return %arg0, %c0_i32 : i32, i32
  }
  func.func @transform_1(%arg0: i32) -> (i32, i32) {
    %c0_i32 = arith.constant 0 : i32
    %c0_i32_0 = arith.constant 0 : i32
    %c0_i32_1 = arith.constant 0 : i32
    return %c0_i32, %c0_i32_0 : i32, i32
  }
  func.func @transform_2(%arg0: i32) -> (i32, i32) {
    %c0_i32 = arith.constant 0 : i32
    %c0_i32_0 = arith.constant 0 : i32
    %c0_i32_1 = arith.constant 0 : i32
    return %c0_i32, %c0_i32_0 : i32, i32
  }
  func.func @transform_3(%arg0: i32) -> (i32, i32) {
    %c0_i32 = arith.constant 0 : i32
    %c0_i32_0 = arith.constant 0 : i32
    return %arg0, %c0_i32 : i32, i32
  }
  func.func @transform_4(%arg0: i32) -> (i32, i32) {
    %c0_i32 = arith.constant 0 : i32
    %c0_i32_0 = arith.constant 0 : i32
    %c0_i32_1 = arith.constant 0 : i32
    return %c0_i32, %c0_i32_0 : i32, i32
  }
  func.func @transform_5(%arg0: i32) -> (i32, i32) {
    %c0_i32 = arith.constant 0 : i32
    %c0_i32_0 = arith.constant 0 : i32
    return %arg0, %c0_i32 : i32, i32
  }
}

</mosaic_0001>

<bundles_post_ra>
// kernel: tpu_custom_call.1
= control target key start
LH: loop header
LB: loop body
LE: loop exit
PB: predicated region body
PF: predicated region fallthrough
CT: control target
= control target key end

     0   :  { %vm26_vm0 = vcmask 261120   ;;  %v407_v0 = vmov 0.0   ;;  %vm408_vm1 = vmmov 0   ;;  %v409_v5 = vmov 0   ;;  %s514_s4 = inlined_call_operand.vmem [shape: bf16[8,32], index: 4, kind: input, shape index: {}]   ;;  %s515_s3 = inlined_call_operand.vmem [shape: bf16[8,32], index: 3, kind: input, shape index: {}]   ;;  %s516_s0 = inlined_call_operand.vmem [shape: s32[8,1], index: 0, kind: input, shape index: {}]   ;;  %s517_s2 = inlined_call_operand.vmem [shape: f32[1,8], index: 2, kind: input, shape index: {}]   ;;  %s518_s1 = inlined_call_operand.vmem [shape: s32[1,8], index: 1, kind: input, shape index: {}]   ;;  %s519_s5 = inlined_call_operand.vmem [shape: f32[8,2], index: 5, kind: output, shape index: {}]  }
   0x1   :  { %371 = vmatprep.subr.bf16.mxu0 %v407_v0  ;;  %v444_v1 = vld [vmem:[%s514_s4] sm:$0xf]  ;;  %373 = vmatprep.mubr.msk.bf16.mxu0 %vm408_vm1, %v407_v0  ;;  %vm99_vm3 = vcmask 64512   ;;  %v96_v25 = vlaneseq  ;;  %vm206_vm14 = vcmask 1043456  }
   0x2   :  { %v21_v2 = vld [vmem:[%s515_s3] sm:$0xf]  ;;  %v34_v3 = vsel %vm26_vm0, %v444_v1, 0  ;;  %392 = vset.pattern.permute.xlu0 %v409_v5  ;;  %377 = vmatprep.subr.bf16.mxu1 %v407_v0 }
   0x3   :  { %v453_v4 = vunpack.c.l.bf16 %v21_v2  ;;  %372 = vmatpush3.bf16.xpose.msra.mxu0 %v34_v3  ;;  %379 = vmatprep.mubr.msk.bf16.mxu1 %vm408_vm1, %v407_v0  ;;  %v86_v8 = vld [vmem:[%s516_s0] sm:$0xff]  ;;  %v473_v26 = vand.u32 127, %v96_v25 }
   0x4   :  { %v355_v10 = vld [vmem:[%s517_s2] ss:$0 sm:$0xff] }
   0x5   :  { %v25_v6 = vmul.f32 %v453_v4, %v453_v4  ;;  %v356_v14 = vld [vmem:[%s518_s1] ss:$0 sm:$0xff] }
   0x7   :  { %v27_v7 = vsel %vm26_vm0, %v25_v6, 0.0 }
   0x8   :  { %28 = vadd.xlane.f32.xlu0 %v27_v7 }
   0xa   :  { %374 = vmatmul.mubr.msk.bf16.vlgmr.msra.gmra.mxu0 %vm26_vm0, %v21_v2 }
  0x1e   :  { %89 = vperm.xlu0 %392, %v86_v8  }
  0x91   :  { %v29_v9 = vpop.xlane.xlu0 %28 }
  0x92   :  { %v82_v12 = vadd.f32 %v355_v10, %v29_v9 }
  0x99   :  { %v90_v15 = vpop.permute.xlu0 %89 }
  0x9a   :  { %vm95_vm2 = vcmp.eq.s32.totalorder %v90_v15, %v356_v14 }
  0xca   :  { %v70_v11 = vpop.f32.mrf.mxu0 }
  0xcb   :  { %v83_v13 = vmul.f32 2.0, %v70_v11 }
  0xcc   :  { %v375_v16 = vpop.f32.mrf.mxu0 }
  0xcd   :  { %v84_v17 = vsub.f32 %v82_v12, %v83_v13  ;;  %v207_v16 = vsel %vm206_vm14, %v444_v1, 0 }
  0xce   :  { %v73_v18 = vpop.f32.mrf.mxu0  ;;  %378 = vmatpush3.bf16.msra.mxu1 %v207_v16 }
  0xcf   :  { %v85_v19 = vmax.f32 %v84_v17, 0.0  ;;  %383 = vmatprep.subr.bf16.mxu1 %v407_v0 }
  0xd0   :  { %v376_v20 = vpop.f32.mrf.mxu0 }
  0xd1   :  { %v98_v21 = vsel %vm95_vm2, %v85_v19, -1e+30  ;;  %v151_v23 = vsel %vm95_vm2, 1e+30, %v85_v19 }
  0xd2   :  { %v100_v22 = vsel %vm99_vm3, %v98_v21, -inf  ;;  %v152_v24 = vsel %vm99_vm3, %v151_v23, inf }
  0xd3   :  { %101 = vmax.xlane.f32.xlu1 %v100_v22 }
  0xd7   :  { %153 = vmin.xlane.f32.xlu1 %v152_v24 }
 0x15c   :  { %v102_v27 = vpop.xlane.xlu1 %101 }
 0x15d   :  { %vm103_vm4 = vcmp.eq.f32.partialorder %v98_v21, %v102_v27 }
 0x15e   :  { %v104_v28 = vsel %vm103_vm4, %v473_v26, 8 }
 0x15f   :  { %v105_v29 = vsel %vm99_vm3, %v104_v28, 2147483647 }
 0x160   :  { %v154_v30 = vpop.xlane.xlu1 %153  ;;  %v107_v31 = vshra.s32 %v105_v29, 16  ;;  %v106_v37 = vand.u32 65535, %v105_v29 }
 0x161   :  { %vm155_vm5 = vcmp.eq.f32.partialorder %v151_v23, %v154_v30 }
 0x162   :  { %v156_v32 = vsel %vm155_vm5, %v473_v26, 8  ;;  %v109_v33 = vcvt.s32.f32 %v107_v31  ;;  %v108_v39 = vcvt.s32.f32 %v106_v37 }
 0x163   :  { %v157_v34 = vsel %vm99_vm3, %v156_v32, 2147483647 }
 0x164   :  { %110 = vmin.xlane.f32.xlu1 %v109_v33  ;;  %v159_v35 = vshra.s32 %v157_v34, 16  ;;  %v158_v40 = vand.u32 65535, %v157_v34 }
 0x166   :  { %v161_v36 = vcvt.s32.f32 %v159_v35  ;;  %v160_v43 = vcvt.s32.f32 %v158_v40 }
 0x168   :  { %162 = vmin.xlane.f32.xlu1 %v161_v36 }
 0x1ed   :  { %v111_v38 = vpop.xlane.xlu1 %110 }
 0x1ee   :  { %vm112_vm6 = vcmp.eq.f32.partialorder %v109_v33, %v111_v38  ;;  %v117_v45 = vcvt.f32.s32 %v111_v38 }
 0x1ef   :  { %v113_v41 = vsel %vm112_vm6, %v108_v39, inf  ;;  %vm348_vm6 = vcmask 15360  }
 0x1f0   :  { %114 = vmin.xlane.f32.xlu1 %v113_v41  ;;  %v118_v47 = vshll.u32 %v117_v45, 16 }
 0x1f1   :  { %v163_v42 = vpop.xlane.xlu1 %162 }
 0x1f2   :  { %vm164_vm7 = vcmp.eq.f32.partialorder %v161_v36, %v163_v42  ;;  %v169_v48 = vcvt.f32.s32 %v163_v42 }
 0x1f3   :  { %v165_v44 = vsel %vm164_vm7, %v160_v43, inf }
 0x1f4   :  { %166 = vmin.xlane.f32.xlu1 %v165_v44  ;;  %v170_v52 = vshll.u32 %v169_v48, 16 }
 0x279   :  { %v115_v46 = vpop.xlane.xlu1 %114 }
 0x27a   :  { %v116_v49 = vcvt.f32.s32 %v115_v46 }
 0x27c   :  { %v119_v50 = vadd.s32 %v118_v47, %v116_v49 }
 0x27d   :  { %v167_v51 = vpop.xlane.xlu1 %166 }
 0x27e   :  { %v168_v53 = vcvt.f32.s32 %v167_v51  ;;  %vm120_vm8 = vcmp.eq.s32.totalorder %v473_v26, %v119_v50 }
 0x27f   :  { %v125_v54 = vsel %vm120_vm8, -inf, %v98_v21  ;;  %v357_v18 = vsel %vm120_vm8, 1.0, %v407_v0 }
 0x280   :  { %v171_v55 = vadd.s32 %v170_v52, %v168_v53  ;;  %v126_v56 = vsel %vm99_vm3, %v125_v54, -inf }
 0x281   :  { %127 = vmax.xlane.f32.xlu1 %v126_v56 }
 0x282   :  { %vm172_vm9 = vcmp.eq.s32.totalorder %v473_v26, %v171_v55 }
 0x283   :  { %v177_v57 = vsel %vm172_vm9, inf, %v151_v23  ;;  %v123_v23 = vpack.c.bf16 %v357_v18, %v357_v18  ;;  %v359_v32 = vsel %vm172_vm9, 1.0, %v407_v0 }
 0x284   :  { %v178_v58 = vsel %vm99_vm3, %v177_v57, inf  ;;  %v175_v35 = vpack.c.bf16 %v359_v32, %v359_v32 }
 0x285   :  { %179 = vmin.xlane.f32.xlu1 %v178_v58  ;;  %v124_v29 = vadd.bf16 0, %v123_v23 }
 0x286   :  { %v176_v37 = vadd.bf16 0, %v175_v35 }
 0x30a   :  { %v128_v59 = vpop.xlane.xlu1 %127 }
 0x30b   :  { %vm129_vm10 = vcmp.eq.f32.partialorder %v125_v54, %v128_v59 }
 0x30c   :  { %v130_v60 = vsel %vm129_vm10, %v473_v26, 8 }
 0x30d   :  { %v131_v61 = vsel %vm99_vm3, %v130_v60, 2147483647 }
 0x30e   :  { %v180_v62 = vpop.xlane.xlu1 %179  ;;  %v133_v63 = vshra.s32 %v131_v61, 16  ;;  %v132_v8 = vand.u32 65535, %v131_v61 }
 0x30f   :  { %vm181_vm11 = vcmp.eq.f32.partialorder %v177_v57, %v180_v62 }
 0x310   :  { %v182_v2 = vsel %vm181_vm11, %v473_v26, 8  ;;  %v135_v3 = vcvt.s32.f32 %v133_v63  ;;  %v134_v10 = vcvt.s32.f32 %v132_v8 }
 0x311   :  { %v183_v5 = vsel %vm99_vm3, %v182_v2, 2147483647 }
 0x312   :  { %136 = vmin.xlane.f32.xlu1 %v135_v3  ;;  %v185_v6 = vshra.s32 %v183_v5, 16  ;;  %v184_v11 = vand.u32 65535, %v183_v5 }
 0x314   :  { %v187_v7 = vcvt.s32.f32 %v185_v6  ;;  %v186_v14 = vcvt.s32.f32 %v184_v11 }
 0x316   :  { %188 = vmin.xlane.f32.xlu1 %v187_v7 }
 0x39b   :  { %v137_v9 = vpop.xlane.xlu1 %136 }
 0x39c   :  { %vm138_vm12 = vcmp.eq.f32.partialorder %v135_v3, %v137_v9  ;;  %v143_v17 = vcvt.f32.s32 %v137_v9 }
 0x39d   :  { %v139_v12 = vsel %vm138_vm12, %v134_v10, inf }
 0x39e   :  { %140 = vmin.xlane.f32.xlu1 %v139_v12  ;;  %v144_v20 = vshll.u32 %v143_v17, 16 }
 0x39f   :  { %v189_v13 = vpop.xlane.xlu1 %188 }
 0x3a0   :  { %vm190_vm13 = vcmp.eq.f32.partialorder %v187_v7, %v189_v13  ;;  %v195_v21 = vcvt.f32.s32 %v189_v13 }
 0x3a1   :  { %v191_v15 = vsel %vm190_vm13, %v186_v14, inf }
 0x3a2   :  { %192 = vmin.xlane.f32.xlu1 %v191_v15  ;;  %v196_v27 = vshll.u32 %v195_v21, 16 }
 0x427   :  { %v141_v19 = vpop.xlane.xlu1 %140 }
 0x428   :  { %v142_v22 = vcvt.f32.s32 %v141_v19 }
 0x42a   :  { %v145_v24 = vadd.s32 %v144_v20, %v142_v22 }
 0x42b   :  { %v193_v25 = vpop.xlane.xlu1 %192 }
 0x42c   :  { %vm146_vm15 = vcmp.eq.s32.totalorder %v473_v26, %v145_v24  ;;  %v194_v28 = vcvt.f32.s32 %v193_v25 }
 0x42d   :  { %v358_v1 = vsel %vm146_vm15, 1.0, %v407_v0 }
 0x42e   :  { %v149_v30 = vpack.c.bf16 %v358_v1, %v358_v1  ;;  %v197_v31 = vadd.s32 %v196_v27, %v194_v28 }
 0x430   :  { %vm198_vm2 = vcmp.eq.s32.totalorder %v473_v26, %v197_v31  ;;  %v150_v33 = vadd.bf16 %v149_v30, %v124_v29 }
 0x431   :  { %v360_v34 = vsel %vm198_vm2, 1.0, %v407_v0 }
 0x432   :  { %380 = vmatmul.mubr.msk.bf16.vlgmr.msra.gmra.mxu1 %vm99_vm3, %v150_v33  ;;  %v201_v36 = vpack.c.bf16 %v360_v34, %v360_v34 }
 0x433   :  { %384 = vmatpush3.bf16.msra.mxu1 %v207_v16  ;;  %385 = vmatprep.mubr.msk.bf16.mxu1 %vm408_vm1, %v407_v0 }
 0x434   :  { %v202_v38 = vadd.bf16 %v201_v36, %v176_v37 }
 0x43a   :  { %386 = vmatmul.mubr.msk.bf16.vlgmr.msra.gmra.mxu1 %vm99_vm3, %v202_v38 }
 0x4f2   :  { %v243_v39 = vpop.f32.mrf.mxu1 }
 0x4f3   :  { %v249_v40 = vmul.f32 0.5, %v243_v39 }
 0x4f4   :  { %v381_v41 = vpop.f32.mrf.mxu1 }
 0x4f5   :  { %v294_v26 = vsub.f32 %v453_v4, %v249_v40 }
 0x4f6   :  { %v246_v42 = vpop.f32.mrf.mxu1 }
 0x4f7   :  { %v296_v43 = vmul.f32 %v294_v26, %v294_v26 }
 0x4f8   :  { %v382_v44 = vpop.f32.mrf.mxu1 }
 0x4f9   :  { %v297_v45 = vsel %vm26_vm0, %v296_v43, 0.0 }
 0x4fa   :  { %298 = vadd.xlane.f32.xlu0 %v297_v45  ;;  %v287_v46 = vpop.f32.mrf.mxu1 }
 0x4fb   :  { %v293_v47 = vmul.f32 0.5, %v287_v46 }
 0x4fc   :  { %v387_v48 = vpop.f32.mrf.mxu1 }
 0x4fd   :  { %v295_v0 = vsub.f32 %v453_v4, %v293_v47 }
 0x4fe   :  { %v290_v49 = vpop.f32.mrf.mxu1 }
 0x4ff   :  { %v307_v50 = vmul.f32 %v295_v0, %v295_v0 }
 0x500   :  { %v388_v51 = vpop.f32.mrf.mxu1 }
 0x501   :  { %v308_v52 = vsel %vm26_vm0, %v307_v50, 0.0  ;;  %vm346_vm0 = vcmask 7168  }
 0x502   :  { %309 = vadd.xlane.f32.xlu1 %v308_v52 }
 0x583   :  { %v299_v53 = vpop.xlane.xlu0 %298 }
 0x584   :  { %393 = vrsqrt.f32 %v299_v53  ;;  %vm302_vm1 = vcmp.eq.f32.partialorder %v299_v53, inf  ;;  %v305_v60 = vand.u32 2147483648, %v299_v53  ;;  %vm304_vm4 = vcmp.eq.f32.partialorder %v299_v53, 0.0 }
 0x58b   :  { %v310_v54 = vpop.xlane.xlu1 %309 }
 0x58c   :  { %395 = vrsqrt.f32 %v310_v54  ;;  %vm313_vm3 = vcmp.eq.f32.partialorder %v310_v54, inf  ;;  %v316_v61 = vand.u32 2147483648, %v310_v54  ;;  %vm315_vm5 = vcmp.eq.f32.partialorder %v310_v54, 0.0 }
 0x591   :  { %v394_v55 = vpop.eup %393 }
 0x592   :  { %v301_v56 = vmul.f32 %v394_v55, %v299_v53 }
 0x594   :  { %v303_v58 = vsel %vm302_vm1, %v299_v53, %v301_v56 }
 0x595   :  { %v306_v62 = vsel %vm304_vm4, %v305_v60, %v303_v58 }
 0x599   :  { %v396_v57 = vpop.eup %395 }
 0x59a   :  { %v312_v59 = vmul.f32 %v396_v57, %v310_v54 }
 0x59c   :  { %v314_v4 = vsel %vm313_vm3, %v310_v54, %v312_v59 }
 0x59d   :  { %v317_v63 = vsel %vm315_vm5, %v316_v61, %v314_v4 }
 0x59e   :  { %v318_v2 = vmax.f32 %v306_v62, %v317_v63 }
 0x5a0   :  { %v319_v3 = vsub.f32 %v306_v62, %v318_v2  ;;  %v322_v5 = vsub.f32 %v317_v63, %v318_v2 }
 0x5a2   :  { %v320_v6 = vmul.f32 1.442695, %v319_v3  ;;  %v323_v7 = vmul.f32 1.442695, %v322_v5 }
 0x5a4   :  { %397 = vpow2.f32 %v320_v6 }
 0x5a5   :  { %399 = vpow2.f32 %v323_v7 }
 0x5b1   :  { %v398_v8 = vpop.eup %397 }
 0x5b2   :  { %v400_v9 = vpop.eup %399 }
 0x5b3   :  { %v325_v10 = vadd.f32 %v400_v9, %v398_v8 }
 0x5b5   :  { %401 = vlog2.f32 %v325_v10 }
 0x5c2   :  { %v402_v11 = vpop.eup %401 }
 0x5c3   :  { %v327_v12 = vmul.f32 0.6931472, %v402_v11 }
 0x5c5   :  { %v328_v13 = vadd.f32 %v327_v12, %v318_v2 }
 0x5c7   :  { %v329_v14 = vsub.f32 %v306_v62, %v328_v13  ;;  %v332_v15 = vsub.f32 %v317_v63, %v328_v13 }
 0x5c9   :  { %v330_v16 = vmul.f32 1.442695, %v329_v14  ;;  %v333_v17 = vmul.f32 1.442695, %v332_v15 }
 0x5cb   :  { %403 = vpow2.f32 %v330_v16 }
 0x5cc   :  { %405 = vpow2.f32 %v333_v17 }
 0x5d8   :  { %v404_v18 = vpop.eup %403 }
 0x5d9   :  { %v406_v19 = vpop.eup %405  ;;  %v335_v20 = vsub.f32 1.25, %v404_v18  ;;  %v363_v27 = vadd.f32 -0.75, %v404_v18 }
 0x5da   :  { %v337_v21 = vadd.f32 0.25, %v406_v19  ;;  %v364_v24 = vadd.f32 -0.25, %v406_v19 }
 0x5db   :  { %v336_v22 = vmax.f32 %v335_v20, 0.0 }
 0x5dc   :  { %v338_v23 = vmax.f32 %v337_v21, 0.0 }
 0x5dd   :  { %v339_v25 = vsub.f32 0.0, %v336_v22 }
 0x5de   :  { %v344_v28 = vmul.f32 %v364_v24, %v338_v23 }
 0x5df   :  { %v341_v1 = vmul.f32 %v363_v27, %v339_v25 }
 0x5e0   :  { %v345_v30 = vmul.f32 128.0, %v344_v28 }
 0x5e1   :  { %v342_v29 = vmul.f32 128.0, %v341_v1 }
 0x5e3   :  { %v347_v31 = vsel %vm346_vm0, %v342_v29, %v345_v30 }
 0x5e4   :  { %349 = vst.msk [vmem:[%s519_s5] sm:$0xff] %vm348_vm6, %v347_v31 }

</bundles_post_ra>
